<compile_context>
chip_gen: v7x
topology: tpu7x:2x2x1
jax: 0.10.0
libtpu: 0.0.40
codegen_flags: <defaults>
</compile_context>

<pallas_src>
import functools

import jax
import jax.numpy as jnp
from jax.experimental import pallas as pl
from jax.experimental.pallas import tpu as pltpu


# ----------------------------------------------------------------------------- helpers
def _round_up(x, m):
    return ((x + m - 1) // m) * m


def _cdiv(a, b):
    return -(-a // b)


def _apply_act(y, act):
    if act is None:
        return y
    if act == "relu":
        return jnp.maximum(y, 0.0)
    if act == "sigmoid":
        return jax.nn.sigmoid(y)
    if act == "tanh":
        return jnp.tanh(y)
    raise ValueError(f"unknown activation {act}")


def _padded_bytes(shape, dtype):
    """Approximate VMEM footprint of a 2-D array after (sublane, 128) tiling."""
    r, c = shape[-2], shape[-1]
    itemsize = jnp.dtype(dtype).itemsize
    sub = max(8, 32 // itemsize)  # 8 for f32, 16 for bf16
    return _round_up(max(r, 1), sub) * _round_up(max(c, 1), 128) * itemsize


def _vmem_capacity_bytes():
    try:
        info = pltpu.get_tpu_info()
        cap = getattr(info, "vmem_capacity_bytes", None)
        if cap:
            return int(cap)
    except Exception:
        pass
    return 64 * 1024 * 1024  # conservative fallback (v7x-sized)


# Generation-aware budgets (v5e/v6e: 128 MiB physical -> ~92/96 MiB scoped;
# v7x: 64 MiB physical -> ~46 MiB scoped, tiled working set capped <= 40 MiB).
_PHYS_VMEM_BYTES = _vmem_capacity_bytes()
_VMEM_LIMIT = int(min(0.72 * _PHYS_VMEM_BYTES, 96 * 1024 * 1024))
_FUSED_BUDGET = int(0.85 * _VMEM_LIMIT)          # gate for the fused fast path
_TILED_WS_BUDGET = int(min(0.60 * _PHYS_VMEM_BYTES, 40 * 1024 * 1024))

_TB_CAP = 256   # fused-path batch-tile rows
_TM_CAP = 512   # tiled-path M-tile rows


# ----------------------------------------------------------------------------- single-buffered resident operands
_BUFFERED1_OK = [None]


def _single_buffer_supported():
    """Probe once whether pipeline_mode=pl.Buffered(1) is supported so
    grid-invariant weights/biases can be kept single-buffered (halving their
    VMEM footprint).  Falls back cleanly to default double buffering."""
    if _BUFFERED1_OK[0] is None:
        try:
            spec = pl.BlockSpec((8, 128), lambda i: (0, 0),
                                pipeline_mode=pl.Buffered(1))

            def _probe(x_ref, o_ref):
                o_ref[...] = x_ref[...] + 1.0

            out = pl.pallas_call(
                _probe,
                out_shape=jax.ShapeDtypeStruct((8, 128), jnp.float32),
                grid=(1,),
                in_specs=[spec],
                out_specs=pl.BlockSpec((8, 128), lambda i: (0, 0)),
            )(jnp.zeros((8, 128), jnp.float32))
            jax.block_until_ready(out)
            _BUFFERED1_OK[0] = True
        except Exception:
            _BUFFERED1_OK[0] = False
    return _BUFFERED1_OK[0]


def _resident_spec(shape, single_buffer):
    """Whole-array spec for a grid-invariant operand (weight / bias)."""
    if single_buffer:
        return pl.BlockSpec(shape, lambda i: (0, 0), pipeline_mode=pl.Buffered(1))
    return pl.BlockSpec(shape, lambda i: (0, 0))


def _fused_vmem_bytes(tb, params, weight_buffers):
    """Rough VMEM footprint of the fused path for one batch tile of tb rows."""
    dims = [params[0][0].shape[0]] + [wt.shape[1] for wt, _ in params]
    max_d = max(dims)
    total = 2 * _padded_bytes((tb, dims[0]), jnp.float32)    # input (double-buffered)
    total += 2 * _padded_bytes((tb, dims[-1]), jnp.float32)  # output (double-buffered)
    total += 2 * _padded_bytes((tb, max_d), jnp.float32)     # in-kernel temporaries
    for wt, b2 in params:
        total += weight_buffers * _padded_bytes(wt.shape, wt.dtype)
        total += weight_buffers * _padded_bytes(b2.shape, b2.dtype)
    return total


# ----------------------------------------------------------------------------- fused whole-MLP kernel
def _fused_mlp_kernel(*refs, acts):
    """refs = [x_ref, w0, b0, w1, b1, ..., w_{L-1}, b_{L-1}, o_ref].

    All layers computed back-to-back for one batch tile; intermediate
    activations never leave VMEM/vregs."""
    x_ref = refs[0]
    o_ref = refs[-1]
    n_layers = (len(refs) - 2) // 2

    h = x_ref[...].astype(jnp.float32)
    for li in range(n_layers):
        wt_ref = refs[1 + 2 * li]          # (Din, Dout), possibly bf16
        b_ref = refs[2 + 2 * li]           # (1, Dout), f32
        y = jnp.dot(h.astype(wt_ref.dtype), wt_ref[...],
                    preferred_element_type=jnp.float32)
        y = y + b_ref[...].astype(jnp.float32)
        h = _apply_act(y, acts[li])
    o_ref[...] = h.astype(o_ref.dtype)


def mlp_fused(x, params, acts, vmem_limit, single_buffer, tb_cap=_TB_CAP):
    """Whole MLP in one pallas_call, grid over batch tiles, resident weights."""
    B, Din = x.shape
    Dout = params[-1][0].shape[1]

    # Adaptive batch tiling: minimal padding (multiple of 8), batch axis is
    # pipelined and megacore-parallel.
    if B <= tb_cap:
        tb, Bp, nb = B, B, 1
    else:
        nb = _cdiv(B, tb_cap)
        tb = _round_up(_cdiv(B, nb), 8)
        Bp = tb * nb
    xp = x if Bp == B else jnp.pad(x, ((0, Bp - B), (0, 0)))

    args = [xp]
    in_specs = [pl.BlockSpec((tb, Din), lambda i: (i, 0))]
    flops = 0
    bytes_accessed = xp.size * xp.dtype.itemsize + Bp * Dout * 4
    for wt, b2 in params:
        args.extend([wt, b2])
        in_specs.append(_resident_spec(wt.shape, single_buffer))
        in_specs.append(_resident_spec(b2.shape, single_buffer))
        flops += 2 * Bp * wt.shape[0] * wt.shape[1]
        bytes_accessed += wt.size * wt.dtype.itemsize + b2.size * b2.dtype.itemsize
    transcendentals = Bp * Dout if acts[-1] in ("sigmoid", "tanh") else 0

    kernel = functools.partial(_fused_mlp_kernel, acts=tuple(acts))
    out = pl.pallas_call(
        kernel,
        out_shape=jax.ShapeDtypeStruct((Bp, Dout), x.dtype),
        grid=(nb,),
        in_specs=in_specs,
        out_specs=pl.BlockSpec((tb, Dout), lambda i: (i, 0)),
        compiler_params=pltpu.CompilerParams(
            dimension_semantics=("parallel",),
            vmem_limit_bytes=vmem_limit),
        cost_estimate=pl.CostEstimate(
            flops=int(flops), transcendentals=int(transcendentals),
            bytes_accessed=int(bytes_accessed)),
    )(*args)
    return out if Bp == B else out[:B]


# ----------------------------------------------------------------------------- tiled single-layer kernel
def _tiled_linear_kernel(x_ref, wt_ref, b_ref, o_ref, *, act):
    """One (tm, tn) f32 output tile.  The output block is revisited across the
    K grid axis, so it is used directly as the accumulator (no scratch)."""
    k = pl.program_id(2)

    @pl.when(k == 0)
    def _init():
        o_ref[...] = jnp.zeros_like(o_ref)

    o_ref[...] += jnp.dot(x_ref[...].astype(wt_ref.dtype), wt_ref[...],
                          preferred_element_type=jnp.float32)

    @pl.when(k == pl.num_programs(2) - 1)
    def _finalize():
        o_ref[...] = _apply_act(o_ref[...] + b_ref[...].astype(jnp.float32), act)


def _select_layer_tiles(din, dout, ws_budget=_TILED_WS_BUDGET, tm_cap=_TM_CAP):
    """Pick (tn, tk) so the double-buffered tile working set fits the
    per-generation budget; prefer full-K tiles (fewest K grid steps)."""
    tn = min(512, _round_up(dout, 128))
    tk = min(_round_up(din, 128), 2048)

    def ws(tk_, tn_):
        return 2 * (tm_cap * tk_ + tk_ * tn_ + tm_cap * tn_) * 4

    while tk > 128 and ws(tk, tn) > ws_budget:
        tk = _round_up(tk // 2, 128)
    while tn > 128 and ws(tk, tn) > ws_budget:
        tn = _round_up(tn // 2, 128)
    return tn, tk


def linear_act_tiled(x, wtp, bp, dout, act, tn, tk,
                     vmem_limit=_VMEM_LIMIT, tm_cap=_TM_CAP):
    """y = act(x @ wtp + bp)[:, :dout] with a (tm, tn, tk) K-accumulating grid.

    wtp (Kp, Np) and bp (1, Np) are padded to tile multiples ONCE at setup
    time; only the activation x is padded here (rows to the M tile, cols to Kp).
    """
    B, Din = x.shape
    Kp, Np = wtp.shape

    # Adaptive tm: bounded batch padding instead of a fixed power-of-two tile.
    if B <= tm_cap:
        tm, Bp = B, B
    else:
        nb = _cdiv(B, tm_cap)
        tm = _round_up(_cdiv(B, nb), 8)
        Bp = tm * nb

    xp = x if (Bp, Kp) == (B, Din) else jnp.pad(x, ((0, Bp - B), (0, Kp - Din)))

    grid = (Bp // tm, Np // tn, Kp // tk)
    kernel = functools.partial(_tiled_linear_kernel, act=act)

    out = pl.pallas_call(
        kernel,
        out_shape=jax.ShapeDtypeStruct((Bp, Np), jnp.float32),
        grid=grid,
        in_specs=[
            pl.BlockSpec((tm, tk), lambda i, j, k: (i, k)),
            pl.BlockSpec((tk, tn), lambda i, j, k: (k, j)),
            pl.BlockSpec((1, tn), lambda i, j, k: (0, j)),
        ],
        out_specs=pl.BlockSpec((tm, tn), lambda i, j, k: (i, j)),
        compiler_params=pltpu.CompilerParams(
            dimension_semantics=("parallel", "parallel", "arbitrary"),
            vmem_limit_bytes=vmem_limit),
        cost_estimate=pl.CostEstimate(
            flops=int(2 * Bp * Kp * Np),
            transcendentals=int(Bp * Np) if act in ("sigmoid", "tanh") else 0,
            bytes_accessed=int(xp.size * xp.dtype.itemsize
                               + wtp.size * wtp.dtype.itemsize
                               + bp.size * bp.dtype.itemsize + Bp * Np * 4)),
    )(xp, wtp, bp)

    if (Bp, Np) != (B, dout):
        out = out[:B, :dout]
    return out


# ----------------------------------------------------------------------------- module mirror
class MLPPallas:
    """Mirror of the PyTorch MLP module's forward semantics."""

    def __init__(self, input_size, hidden_sizes, output_size=1, activation=None,
                 key=None, dtype=jnp.float32, param_dtype=None):
        if key is None:
            key = jax.random.PRNGKey(0)
        if activation not in (None, "relu", "sigmoid", "tanh"):
            raise AssertionError("unknown activation")
        if param_dtype is None:
            param_dtype = dtype  # opt-in: jnp.bfloat16 halves weight DMA bytes
        self.hidden_sizes = list(hidden_sizes)
        self.activation = activation

        # Layer dims exactly as the PyTorch __init__ builds them.
        if len(self.hidden_sizes) != 0:
            dims = [(input_size, self.hidden_sizes[0])]
            for i in range(len(self.hidden_sizes) - 1):
                dims.append((self.hidden_sizes[i], self.hidden_sizes[i + 1]))
            dims.append((self.hidden_sizes[-1], output_size))
        else:
            dims = [(input_size, output_size)]

        # Deterministic init (PyTorch-Linear-style uniform bounds).
        # Weights stored PRE-TRANSPOSED (Din, Dout) in param_dtype; biases kept
        # f32 as (1, Dout) so the epilogue stays f32.
        self.params = []
        for (din, dout) in dims:
            key, kw, kb = jax.random.split(key, 3)
            bound = 1.0 / (din ** 0.5)
            w = jax.random.uniform(kw, (dout, din), jnp.float32, -bound, bound)
            b = jax.random.uniform(kb, (dout,), jnp.float32, -bound, bound)
            self.params.append((jnp.asarray(w.T, dtype=param_dtype),
                                jnp.reshape(b, (1, dout)).astype(jnp.float32)))

        # Per-layer activation schedule matching the PyTorch forward:
        # hidden layers get ReLU, last layer gets the optional final activation.
        n = len(self.params)
        self.acts = tuple(["relu"] * (n - 1) + [activation])

        self._fused_ok = None       # decided lazily (needs the Buffered probe)
        self._tiled_layers = None   # padded weights built lazily, once

    # -- tiled fallback setup: pad weights/biases to tile multiples ONCE ------
    def _ensure_tiled_layers(self):
        if self._tiled_layers is not None:
            return
        layers = []
        for wt, b2 in self.params:
            din, dout = wt.shape
            tn, tk = _select_layer_tiles(din, dout)
            kp, np_ = _round_up(din, tk), _round_up(dout, tn)
            wtp = wt if (kp, np_) == (din, dout) else jnp.pad(
                wt, ((0, kp - din), (0, np_ - dout)))
            bp = b2 if np_ == dout else jnp.pad(b2, ((0, 0), (0, np_ - dout)))
            layers.append((wtp, bp, dout, tn, tk))
        self._tiled_layers = layers

    def __call__(self, X):
        if len(self.params) == 0:
            return X

        if self._fused_ok is None:
            wbuf = 1 if _single_buffer_supported() else 2
            self._fused_ok = (
                _fused_vmem_bytes(_TB_CAP, self.params, wbuf) <= _FUSED_BUDGET)

        if self._fused_ok:
            try:
                # Fast path: whole MLP in one batch-tiled kernel; weights stay
                # resident (single-buffered when supported) and intermediate
                # activations never touch HBM.
                return mlp_fused(X, self.params, self.acts, _VMEM_LIMIT,
                                 single_buffer=_single_buffer_supported())
            except Exception:
                # e.g. an unexpected VMEM overflow: fall back to tiled layers.
                self._fused_ok = False

        # Fallback for weights too large for VMEM: tiled MXU kernel per layer
        # (weights pre-padded once; only activations are padded per call).
        self._ensure_tiled_layers()
        out = X
        for (wtp, bp, dout, tn, tk), act in zip(self._tiled_layers, self.acts):
            out = linear_act_tiled(out, wtp, bp, dout, act, tn, tk)
        return out.astype(X.dtype)


# ----------------------------------------------------------------------------- self-test
if __name__ == "__main__":
    key = jax.random.PRNGKey(0)
    k_x, k_p1, k_p2, k_p3, k_x2, k_x3 = jax.random.split(key, 6)

    def jax_ref(mlp, X):
        ref = X
        n = len(mlp.params)
        for i, (wt, b2) in enumerate(mlp.params):
            ref = ref @ wt.astype(jnp.float32) + b2
            if i < n - 1:
                ref = jnp.maximum(ref, 0.0)
        return _apply_act(ref, mlp.acts[-1])

    # --- Test 1: small fused MLP (typical module use) ------------------------
    batch, input_size = 2, 16
    X = jax.random.normal(k_x, (batch, input_size), jnp.float32)
    mlp = MLPPallas(input_size, [32, 32], output_size=1, activation="sigmoid",
                    key=k_p1)
    out = jax.block_until_ready(mlp(X))
    assert out.shape == (batch, 1)
    assert jnp.allclose(out, jax_ref(mlp, X), atol=1e-5, rtol=1e-5)

    # --- Test 2: tiled fallback path (padding + K-axis in-place accumulation)
    mlp2 = MLPPallas(200, [96], output_size=64, activation="relu", key=k_p2)
    mlp2._fused_ok = False            # force the per-layer tiled path
    X2 = jax.random.normal(k_x2, (40, 200), jnp.float32)
    out2 = jax.block_until_ready(mlp2(X2))
    assert out2.shape == (40, 64)
    assert jnp.allclose(out2, jax_ref(mlp2, X2), atol=5e-3, rtol=5e-3)

    # --- Test 3: fused path with a batch-tiled grid (B > tile, M padding) ----
    mlp3 = MLPPallas(64, [128], output_size=32, activation=None, key=k_p3)
    X3 = jax.random.normal(k_x3, (602, 64), jnp.float32)
    out3 = jax.block_until_ready(mlp3(X3))
    assert out3.shape == (602, 32)
    assert jnp.allclose(out3, jax_ref(mlp3, X3), atol=5e-3, rtol=5e-3)

    print("KERNEL_OK")
</pallas_src>

<mosaic_0001>
module attributes {stable_mosaic.version = 11 : i64} {
  func.func @_probe(%arg0: i32, %arg1: memref<8x128xf32, #tpu.memory_space<vmem>>, %arg2: memref<8x128xf32, #tpu.memory_space<vmem>>) attributes {dimension_semantics = [#tpu.dimension_semantics<arbitrary>], iteration_bounds = array<i64: 1>, scalar_prefetch = 0 : i64, scratch_operands = 0 : i64, tpu.core_type = #tpu.core_type<tc>, window_params = [{pipeline_mode = #tpu.pipeline_mode<synchronous>, transform_indices = @transform_0, window_bounds = array<i64: 8, 128>}, {pipeline_mode = #tpu.pipeline_mode<synchronous>, transform_indices = @transform_1, window_bounds = array<i64: 8, 128>}]} {
    %c0 = arith.constant 0 : index
    %c0_0 = arith.constant 0 : index
    %0 = vector.load %arg1[%c0, %c0_0] : memref<8x128xf32, #tpu.memory_space<vmem>>, vector<8x128xf32>
    %cst = arith.constant 1.000000e+00 : f32
    %1 = vector.broadcast %cst : f32 to vector<8x128xf32>
    %2 = arith.addf %0, %1 : vector<8x128xf32>
    %c0_1 = arith.constant 0 : index
    %c0_2 = arith.constant 0 : index
    %3 = vector.load %arg2[%c0_1, %c0_2] : memref<8x128xf32, #tpu.memory_space<vmem>>, vector<8x128xf32>
    tpu.vector_store %arg2[%c0_1, %c0_2], %2 {strides = array<i32>} : memref<8x128xf32, #tpu.memory_space<vmem>>, vector<8x128xf32>,
    return
  }
  func.func @transform_0(%arg0: i32) -> (i32, i32) {
    %c0_i32 = arith.constant 0 : i32
    %c0_i32_0 = arith.constant 0 : i32
    %c0_i32_1 = arith.constant 0 : i32
    return %c0_i32, %c0_i32_0 : i32, i32
  }
  func.func @transform_1(%arg0: i32) -> (i32, i32) {
    %c0_i32 = arith.constant 0 : i32
    %c0_i32_0 = arith.constant 0 : i32
    %c0_i32_1 = arith.constant 0 : i32
    return %c0_i32, %c0_i32_0 : i32, i32
  }
}

module attributes {stable_mosaic.version = 11 : i64} {
  func.func @_fused_mlp_kernel(%arg0: i32, %arg1: memref<2x16xf32, #tpu.memory_space<vmem>>, %arg2: memref<16x32xf32, #tpu.memory_space<vmem>>, %arg3: memref<1x32xf32, #tpu.memory_space<vmem>>, %arg4: memref<32x32xf32, #tpu.memory_space<vmem>>, %arg5: memref<1x32xf32, #tpu.memory_space<vmem>>, %arg6: memref<32x1xf32, #tpu.memory_space<vmem>>, %arg7: memref<1x1xf32, #tpu.memory_space<vmem>>, %arg8: memref<2x1xf32, #tpu.memory_space<vmem>>) attributes {dimension_semantics = [#tpu.dimension_semantics<parallel>], iteration_bounds = array<i64: 1>, scalar_prefetch = 0 : i64, scratch_operands = 0 : i64, tpu.core_type = #tpu.core_type<tc>, window_params = [{transform_indices = @transform_0, window_bounds = array<i64: 2, 16>}, {pipeline_mode = #tpu.pipeline_mode<synchronous>, transform_indices = @transform_1, window_bounds = array<i64: 16, 32>}, {pipeline_mode = #tpu.pipeline_mode<synchronous>, transform_indices = @transform_2, window_bounds = array<i64: 1, 32>}, {pipeline_mode = #tpu.pipeline_mode<synchronous>, transform_indices = @transform_3, window_bounds = array<i64: 32, 32>}, {pipeline_mode = #tpu.pipeline_mode<synchronous>, transform_indices = @transform_4, window_bounds = array<i64: 1, 32>}, {pipeline_mode = #tpu.pipeline_mode<synchronous>, transform_indices = @transform_5, window_bounds = array<i64: 32, 1>}, {pipeline_mode = #tpu.pipeline_mode<synchronous>, transform_indices = @transform_6, window_bounds = array<i64: 1, 1>}, {transform_indices = @transform_7, window_bounds = array<i64: 2, 1>}]} {
    %c0 = arith.constant 0 : index
    %c0_0 = arith.constant 0 : index
    %0 = vector.load %arg1[%c0, %c0_0] : memref<2x16xf32, #tpu.memory_space<vmem>>, vector<2x16xf32>
    %c0_1 = arith.constant 0 : index
    %c0_2 = arith.constant 0 : index
    %1 = vector.load %arg2[%c0_1, %c0_2] : memref<16x32xf32, #tpu.memory_space<vmem>>, vector<16x32xf32>
    %cst = arith.constant dense<0.000000e+00> : vector<2x32xf32>
    %2 = tpu.matmul %0, %1, %cst {dimension_numbers = #tpu.dot_dimension_numbers<[1], [0], [0], [1], [0, 0, 1, 1], [], []>} : vector<2x16xf32>, vector<16x32xf32>, vector<2x32xf32> -> vector<2x32xf32>
    %c0_3 = arith.constant 0 : index
    %c0_4 = arith.constant 0 : index
    %3 = vector.load %arg3[%c0_3, %c0_4] : memref<1x32xf32, #tpu.memory_space<vmem>>, vector<1x32xf32>
    %4 = vector.broadcast %3 : vector<1x32xf32> to vector<2x32xf32>
    %5 = arith.addf %2, %4 : vector<2x32xf32>
    %cst_5 = arith.constant 0.000000e+00 : f32
    %6 = vector.broadcast %cst_5 : f32 to vector<2x32xf32>
    %7 = arith.maximumf %5, %6 : vector<2x32xf32>
    %c0_6 = arith.constant 0 : index
    %c0_7 = arith.constant 0 : index
    %8 = vector.load %arg4[%c0_6, %c0_7] : memref<32x32xf32, #tpu.memory_space<vmem>>, vector<32x32xf32>
    %cst_8 = arith.constant dense<0.000000e+00> : vector<2x32xf32>
    %9 = tpu.matmul %7, %8, %cst_8 {dimension_numbers = #tpu.dot_dimension_numbers<[1], [0], [0], [1], [0, 0, 1, 1], [], []>} : vector<2x32xf32>, vector<32x32xf32>, vector<2x32xf32> -> vector<2x32xf32>
    %c0_9 = arith.constant 0 : index
    %c0_10 = arith.constant 0 : index
    %10 = vector.load %arg5[%c0_9, %c0_10] : memref<1x32xf32, #tpu.memory_space<vmem>>, vector<1x32xf32>
    %11 = vector.broadcast %10 : vector<1x32xf32> to vector<2x32xf32>
    %12 = arith.addf %9, %11 : vector<2x32xf32>
    %cst_11 = arith.constant 0.000000e+00 : f32
    %13 = vector.broadcast %cst_11 : f32 to vector<2x32xf32>
    %14 = arith.maximumf %12, %13 : vector<2x32xf32>
    %c0_12 = arith.constant 0 : index
    %c0_13 = arith.constant 0 : index
    %15 = vector.load %arg6[%c0_12, %c0_13] : memref<32x1xf32, #tpu.memory_space<vmem>>, vector<32x1xf32>
    %cst_14 = arith.constant dense<0.000000e+00> : vector<2x1xf32>
    %16 = tpu.matmul %14, %15, %cst_14 {dimension_numbers = #tpu.dot_dimension_numbers<[1], [0], [0], [1], [0, 0, 1, 1], [], []>} : vector<2x32xf32>, vector<32x1xf32>, vector<2x1xf32> -> vector<2x1xf32>
    %c0_15 = arith.constant 0 : index
    %c0_16 = arith.constant 0 : index
    %17 = vector.load %arg7[%c0_15, %c0_16] : memref<1x1xf32, #tpu.memory_space<vmem>>, vector<1x1xf32>
    %18 = vector.broadcast %17 : vector<1x1xf32> to vector<2x1xf32>
    %19 = arith.addf %16, %18 : vector<2x1xf32>
    %20 = arith.negf %19 : vector<2x1xf32>
    %21 = math.exp %20 : vector<2x1xf32>
    %cst_17 = arith.constant 1.000000e+00 : f32
    %22 = vector.broadcast %cst_17 : f32 to vector<2x1xf32>
    %23 = arith.addf %22, %21 : vector<2x1xf32>
    %24 = arith.divf %22, %23 : vector<2x1xf32>
    %c0_18 = arith.constant 0 : index
    %c0_19 = arith.constant 0 : index
    %25 = vector.load %arg8[%c0_18, %c0_19] : memref<2x1xf32, #tpu.memory_space<vmem>>, vector<2x1xf32>
    tpu.vector_store %arg8[%c0_18, %c0_19], %24 {strides = array<i32>} : memref<2x1xf32, #tpu.memory_space<vmem>>, vector<2x1xf32>,
    return
  }
  func.func @transform_0(%arg0: i32) -> (i32, i32) {
    %c0_i32 = arith.constant 0 : i32
    %c0_i32_0 = arith.constant 0 : i32
    return %arg0, %c0_i32 : i32, i32
  }
  func.func @transform_1(%arg0: i32) -> (i32, i32) {
    %c0_i32 = arith.constant 0 : i32
    %c0_i32_0 = arith.constant 0 : i32
    %c0_i32_1 = arith.constant 0 : i32
    return %c0_i32, %c0_i32_0 : i32, i32
  }
  func.func @transform_2(%arg0: i32) -> (i32, i32) {
    %c0_i32 = arith.constant 0 : i32
    %c0_i32_0 = arith.constant 0 : i32
    %c0_i32_1 = arith.constant 0 : i32
    return %c0_i32, %c0_i32_0 : i32, i32
  }
  func.func @transform_3(%arg0: i32) -> (i32, i32) {
    %c0_i32 = arith.constant 0 : i32
    %c0_i32_0 = arith.constant 0 : i32
    %c0_i32_1 = arith.constant 0 : i32
    return %c0_i32, %c0_i32_0 : i32, i32
  }
  func.func @transform_4(%arg0: i32) -> (i32, i32) {
    %c0_i32 = arith.constant 0 : i32
    %c0_i32_0 = arith.constant 0 : i32
    %c0_i32_1 = arith.constant 0 : i32
    return %c0_i32, %c0_i32_0 : i32, i32
  }
  func.func @transform_5(%arg0: i32) -> (i32, i32) {
    %c0_i32 = arith.constant 0 : i32
    %c0_i32_0 = arith.constant 0 : i32
    %c0_i32_1 = arith.constant 0 : i32
    return %c0_i32, %c0_i32_0 : i32, i32
  }
  func.func @transform_6(%arg0: i32) -> (i32, i32) {
    %c0_i32 = arith.constant 0 : i32
    %c0_i32_0 = arith.constant 0 : i32
    %c0_i32_1 = arith.constant 0 : i32
    return %c0_i32, %c0_i32_0 : i32, i32
  }
  func.func @transform_7(%arg0: i32) -> (i32, i32) {
    %c0_i32 = arith.constant 0 : i32
    %c0_i32_0 = arith.constant 0 : i32
    return %arg0, %c0_i32 : i32, i32
  }
}

module attributes {stable_mosaic.version = 11 : i64} {
  func.func @_tiled_linear_kernel(%arg0: i32, %arg1: i32, %arg2: i32, %arg3: memref<2x128xf32, #tpu.memory_space<vmem>>, %arg4: memref<128x128xf32, #tpu.memory_space<vmem>>, %arg5: memref<1x128xf32, #tpu.memory_space<vmem>>, %arg6: memref<2x128xf32, #tpu.memory_space<vmem>>) attributes {dimension_semantics = [#tpu.dimension_semantics<parallel>, #tpu.dimension_semantics<parallel>, #tpu.dimension_semantics<arbitrary>], iteration_bounds = array<i64: 1, 1, 1>, scalar_prefetch = 0 : i64, scratch_operands = 0 : i64, tpu.core_type = #tpu.core_type<tc>, window_params = [{transform_indices = @transform_0, window_bounds = array<i64: 2, 128>}, {transform_indices = @transform_1, window_bounds = array<i64: 128, 128>}, {transform_indices = @transform_2, window_bounds = array<i64: 1, 128>}, {transform_indices = @transform_3, window_bounds = array<i64: 2, 128>}]} {
    %c0_i32 = arith.constant 0 : i32
    %0 = arith.cmpi eq, %arg2, %c0_i32 : i32
    %1 = arith.extui %0 : i1 to i32
    %c0_i32_0 = arith.constant 0 : i32
    %2 = arith.cmpi ne, %1, %c0_i32_0 : i32
    scf.if %2 {
      %cst_10 = arith.constant 0.000000e+00 : f32
      %12 = vector.broadcast %cst_10 : f32 to vector<2x128xf32>
      %c0_11 = arith.constant 0 : index
      %c0_12 = arith.constant 0 : index
      %13 = vector.load %arg6[%c0_11, %c0_12] : memref<2x128xf32, #tpu.memory_space<vmem>>, vector<2x128xf32>
      tpu.vector_store %arg6[%c0_11, %c0_12], %12 {strides = array<i32>} : memref<2x128xf32, #tpu.memory_space<vmem>>, vector<2x128xf32>,
    } else {
    }
    %c0 = arith.constant 0 : index
    %c0_1 = arith.constant 0 : index
    %3 = vector.load %arg6[%c0, %c0_1] : memref<2x128xf32, #tpu.memory_space<vmem>>, vector<2x128xf32>
    %c0_2 = arith.constant 0 : index
    %c0_3 = arith.constant 0 : index
    %4 = vector.load %arg3[%c0_2, %c0_3] : memref<2x128xf32, #tpu.memory_space<vmem>>, vector<2x128xf32>
    %c0_4 = arith.constant 0 : index
    %c0_5 = arith.constant 0 : index
    %5 = vector.load %arg4[%c0_4, %c0_5] : memref<128x128xf32, #tpu.memory_space<vmem>>, vector<128x128xf32>
    %cst = arith.constant dense<0.000000e+00> : vector<2x128xf32>
    %6 = tpu.matmul %4, %5, %cst {dimension_numbers = #tpu.dot_dimension_numbers<[1], [0], [0], [1], [0, 0, 1, 1], [], []>} : vector<2x128xf32>, vector<128x128xf32>, vector<2x128xf32> -> vector<2x128xf32>
    %7 = arith.addf %3, %6 : vector<2x128xf32>
    %c0_6 = arith.constant 0 : index
    %c0_7 = arith.constant 0 : index
    %8 = vector.load %arg6[%c0_6, %c0_7] : memref<2x128xf32, #tpu.memory_space<vmem>>, vector<2x128xf32>
    tpu.vector_store %arg6[%c0_6, %c0_7], %7 {strides = array<i32>} : memref<2x128xf32, #tpu.memory_space<vmem>>, vector<2x128xf32>,
    %c0_i32_8 = arith.constant 0 : i32
    %9 = arith.cmpi eq, %arg2, %c0_i32_8 : i32
    %10 = arith.extui %9 : i1 to i32
    %c0_i32_9 = arith.constant 0 : i32
    %11 = arith.cmpi ne, %10, %c0_i32_9 : i32
    scf.if %11 {
      %c0_10 = arith.constant 0 : index
      %c0_11 = arith.constant 0 : index
      %12 = vector.load %arg6[%c0_10, %c0_11] : memref<2x128xf32, #tpu.memory_space<vmem>>, vector<2x128xf32>
      %c0_12 = arith.constant 0 : index
      %c0_13 = arith.constant 0 : index
      %13 = vector.load %arg5[%c0_12, %c0_13] : memref<1x128xf32, #tpu.memory_space<vmem>>, vector<1x128xf32>
      %14 = vector.broadcast %13 : vector<1x128xf32> to vector<2x128xf32>
      %15 = arith.addf %12, %14 : vector<2x128xf32>
      %cst_14 = arith.constant 0.000000e+00 : f32
      %16 = vector.broadcast %cst_14 : f32 to vector<2x128xf32>
      %17 = arith.maximumf %15, %16 : vector<2x128xf32>
      %c0_15 = arith.constant 0 : index
      %c0_16 = arith.constant 0 : index
      %18 = vector.load %arg6[%c0_15, %c0_16] : memref<2x128xf32, #tpu.memory_space<vmem>>, vector<2x128xf32>
      tpu.vector_store %arg6[%c0_15, %c0_16], %17 {strides = array<i32>} : memref<2x128xf32, #tpu.memory_space<vmem>>, vector<2x128xf32>,
    } else {
    }
    return
  }
  func.func @transform_0(%arg0: i32, %arg1: i32, %arg2: i32) -> (i32, i32) {
    %c0_i32 = arith.constant 0 : i32
    return %arg0, %arg2 : i32, i32
  }
  func.func @transform_1(%arg0: i32, %arg1: i32, %arg2: i32) -> (i32, i32) {
    %c0_i32 = arith.constant 0 : i32
    return %arg2, %arg1 : i32, i32
  }
  func.func @transform_2(%arg0: i32, %arg1: i32, %arg2: i32) -> (i32, i32) {
    %c0_i32 = arith.constant 0 : i32
    %c0_i32_0 = arith.constant 0 : i32
    return %c0_i32, %arg1 : i32, i32
  }
  func.func @transform_3(%arg0: i32, %arg1: i32, %arg2: i32) -> (i32, i32) {
    %c0_i32 = arith.constant 0 : i32
    return %arg0, %arg1 : i32, i32
  }
}

</mosaic_0001>

<bundles_post_ra>
// kernel: tpu_custom_call.1
= control target key start
LH: loop header
LB: loop body
LE: loop exit
PB: predicated region body
PF: predicated region fallthrough
CT: control target
= control target key end

     0   :  { %6 = vsyncpa [#allocation3], 0  ;;  %s125_s0 = inlined_call_operand.hbm [shape: f32[8,128], index: 0, kind: input, shape index: {}]   ;;  %s126_s1 = inlined_call_operand.hbm [shape: f32[8,128], index: 1, kind: output, shape index: {}]  }
   0x1   :  { %7 = vsyncpa [#allocation4], 0  ;;  %s89_s6 = smov [#allocation2]   ;;  %s41_s10 = scalar_lea.hbm %s125_s0, 128 }
   0x2   :  { %s14_s7 = sshll.u32 %s89_s6, 4  ;;  %p42_p0 = scmp.ne.s32.totalorder %s125_s0, %s41_s10  ;;  %s15_s7 = int_to_ptr.vmem [resolvable:$true] %s14_s7 }
   0x3   :  { %p45_p1 = scmp.lt.u32.totalorder %s41_s10, %s125_s0 }
   0x5   :  { %p47_p2 = pnand %p45_p1, %p42_p0 }
   0x7   :  { %50 = shalt.err (!%p47_p2)
}
   0x8   :  { %s51_s15 = scalar_lea.vmem %s15_s7, 128  ;;  %p56_p4 = scmp.lt.s32.totalorder %s15_s7, %s15_s7 }
   0x9   :  { %p52_p3 = scmp.ne.s32.totalorder %s15_s7, %s51_s15  ;;  %p57_p5 = scmp.lt.s32.totalorder %s51_s15, %s51_s15 }
   0xb   :  { %p58_p6 = por %p57_p5, %p56_p4 }
   0xd   :  { %p59_p7 = pnand %p58_p6, %p52_p3 }
   0xf   :  { %62 = shalt.err (!%p59_p7)
}
  0x10   :  { %17 = dma.hbm_to_vmem [thread:$0]  %s125_s0, 128, %s15_s7, [#allocation3]  }
  0x11   :  { %85 = dma.done.wait [#allocation3], 128  }
  0x12   :  { %86 = vsyncadd [#allocation3], 4294967168  ;;  %s90_s18 = smov [#allocation5]   ;;  %v21_v0 = vld [vmem:[#allocation2] sm:$0xff] }
  0x13   :  { %s30_s19 = sshll.u32 %s90_s18, 4  ;;  %v22_v1 = vadd.f32 1.0, %v21_v0  ;;  %s31_s19 = int_to_ptr.vmem [resolvable:$true] %s30_s19 }
  0x14   :  { %s63_s20 = scalar_lea.vmem %s31_s19, 128  ;;  %p68_p9 = scmp.lt.s32.totalorder %s31_s19, %s31_s19 }
  0x15   :  { %23 = vst [vmem:[#allocation5] sm:$0xff] %v22_v1  ;;  %p64_p8 = scmp.ne.s32.totalorder %s31_s19, %s63_s20  ;;  %p69_p10 = scmp.lt.s32.totalorder %s63_s20, %s63_s20 }
  0x17   :  { %p70_p11 = por %p69_p10, %p68_p9 }
  0x19   :  { %p71_p12 = pnand %p70_p11, %p64_p8 }
  0x1b   :  { %74 = shalt.err (!%p71_p12)
}
  0x1c   :  { %s75_s23 = scalar_lea.hbm %s126_s1, 128 }
  0x1d   :  { %p76_p13 = scmp.ne.s32.totalorder %s126_s1, %s75_s23  ;;  %p79_p0 = scmp.lt.u32.totalorder %s75_s23, %s126_s1 }
  0x1f   :  { %p81_p1 = pnand %p79_p0, %p76_p13 }
  0x21   :  { %84 = shalt.err (!%p81_p1)
}
  0x22   :  { %33 = dma.vmem_to_hbm [thread:$0]  %s31_s19, 128, %s126_s1, [#allocation4]  }
  0x23   :  { %87 = dma.done.wait [#allocation4], 128  }
  0x24   :  { %88 = vsyncadd [#allocation4], 4294967168 }
  0x25   :  { %37 = vsyncpa [#allocation3], 1 }
  0x26   :  { %38 = vsyncpa [#allocation4], 1 }

// kernel: tpu_custom_call.1
= control target key start
LH: loop header
LB: loop body
LE: loop exit
PB: predicated region body
PF: predicated region fallthrough
CT: control target
= control target key end

     0   :  { %s553_s0 = inlined_call_operand.hbm [shape: f32[2,16], index: 0, kind: input, shape index: {}]   ;;  %s554_s1 = inlined_call_operand.vmem [shape: f32[16,32], index: 1, kind: input, shape index: {}]   ;;  %s555_s2 = inlined_call_operand.hbm [shape: f32[1,32], index: 2, kind: input, shape index: {}]   ;;  %s556_s3 = inlined_call_operand.vmem [shape: f32[32,32], index: 3, kind: input, shape index: {}]   ;;  %s557_s4 = inlined_call_operand.vmem [shape: f32[1,32], index: 4, kind: input, shape index: {}]   ;;  %s558_s5 = inlined_call_operand.vmem [shape: f32[32,1], index: 5, kind: input, shape index: {}]   ;;  %s559_s6 = inlined_call_operand.<no memory space> [shape: f32[1,1], index: 6, kind: input, shape index: {}]   ;;  %s560_s7 = inlined_call_operand.vmem [shape: f32[2,1], index: 7, kind: output, shape index: {}]  }
   0x1   :  { %v12_v0 = vstv %s559_s6 }
   0x2   :  { %13 = vst [vmem:[#allocation2] sm:$0x1] %v12_v0 }
   0x3   :  { %14 = vsyncpa [#allocation4], 0 }
   0x4   :  { %15 = vsyncpa [#allocation6], 0  ;;  %s442_s26 = smov [#allocation3]   ;;  %s443_s28 = smov [#allocation5]  }
   0x5   :  { %s22_s27 = sshll.u32 %s442_s26, 4  ;;  %s34_s29 = sshll.u32 %s443_s28, 4  ;;  %s23_s27 = int_to_ptr.vmem [resolvable:$true] %s22_s27  ;;  %s35_s29 = int_to_ptr.vmem [resolvable:$true] %s34_s29 }
   0x6   :  { %s394_s9 = scalar_lea.hbm %s553_s0, 32 }
   0x7   :  { %p395_p0 = scmp.ne.s32.totalorder %s553_s0, %s394_s9  ;;  %p398_p1 = scmp.lt.u32.totalorder %s394_s9, %s553_s0 }
   0x9   :  { %p400_p2 = pnand %p398_p1, %p395_p0 }
   0xb   :  { %403 = shalt.err (!%p400_p2)
}
   0xc   :  { %s404_s6 = scalar_lea.vmem %s23_s27, 32  ;;  %p409_p4 = scmp.lt.s32.totalorder %s23_s27, %s23_s27 }
   0xd   :  { %p405_p3 = scmp.ne.s32.totalorder %s23_s27, %s404_s6  ;;  %p410_p5 = scmp.lt.s32.totalorder %s404_s6, %s404_s6 }
   0xf   :  { %p411_p6 = por %p410_p5, %p409_p4 }
  0x11   :  { %p412_p7 = pnand %p411_p6, %p405_p3 }
  0x13   :  { %415 = shalt.err (!%p412_p7)
}
  0x14   :  { %25 = dma.hbm_to_vmem [thread:$0]  %s553_s0, 32, %s23_s27, [#allocation4]  }
  0x15   :  { %s416_s18 = scalar_lea.hbm %s555_s2, 16 }
  0x16   :  { %p417_p8 = scmp.ne.s32.totalorder %s555_s2, %s416_s18  ;;  %p420_p9 = scmp.lt.u32.totalorder %s416_s18, %s555_s2 }
  0x18   :  { %p422_p10 = pnand %p420_p9, %p417_p8 }
  0x1a   :  { %425 = shalt.err (!%p422_p10)
}
  0x1b   :  { %s426_s23 = scalar_lea.vmem %s35_s29, 16  ;;  %s430_s24 = scalar_lea.vmem %s35_s29, 32 }
  0x1c   :  { %p427_p11 = scmp.ne.s32.totalorder %s35_s29, %s426_s23  ;;  %p431_p12 = scmp.lt.s32.totalorder %s35_s29, %s35_s29 }
  0x1d   :  { %p432_p13 = scmp.lt.s32.totalorder %s430_s24, %s426_s23 }
  0x1f   :  { %p433_p0 = por %p432_p13, %p431_p12 }
  0x21   :  { %p434_p1 = pnand %p433_p0, %p427_p11 }
  0x23   :  { %437 = shalt.err (!%p434_p1)
}
  0x24   :  { %37 = dma.hbm_to_vmem [thread:$0]  %s555_s2, 16, %s35_s29, [#allocation6]  }
  0x25   :  { %438 = dma.done.wait [#allocation4], 32  }
  0x26   :  { %439 = vsyncadd [#allocation4], 4294967264 }
  0x27   :  { %440 = dma.done.wait [#allocation6], 16  }
  0x28   :  { %441 = vsyncadd [#allocation6], 4294967280  ;;  %v444_v1 = vmov 0.0|0.0   ;;  %vm445_vm0 = vmmov 0   ;;  %v446_v2 = vmov 0.0   ;;  %v53_v3 = vld [vmem:[%s554_s1] sm:$0xff] }
  0x29   :  { %370 = vmatprep.subr.bf16.mxu0 %v444_v1  ;;  %345 = vmatprep.mubr.msk.f32.mxu0 %vm445_vm0, %v446_v2  ;;  %v54_v4 = vld [vmem:[%s554_s1 + $0x8] sm:$0xff]  ;;  %v137_v6 = vld [vmem:[%s556_s3] sm:$0xff]  ;;  %vm62_vm1 = vcmask 130048   ;;  %v139_v10 = vld [vmem:[%s556_s3 + $0x10] sm:$0xff]  ;;  %vm148_vm2 = vcmask 261120   ;;  %vm313_vm3 = vcmask 1024  }
  0x2a   :  { %373 = vmatprep.subr.bf16.mxu1 %v444_v1  ;;  %356 = vmatprep.mubr.msk.f32.mxu1 %vm445_vm0, %v446_v2  ;;  %v371_v5 = vpack.c.bf16 %v54_v4, %v53_v3  ;;  %v138_v7 = vld [vmem:[%s556_s3 + $0x8] sm:$0xff]  ;;  %v52_v9 = vld [vmem:[#allocation3] sm:$0x3]  ;;  %v140_v11 = vld [vmem:[%s556_s3 + $0x18] sm:$0xff] }
  0x2b   :  { %v374_v8 = vpack.c.bf16 %v138_v7, %v137_v6  ;;  %v377_v12 = vpack.c.bf16 %v140_v11, %v139_v10  ;;  %v223_v13 = vld [vmem:[%s558_s5] sm:$0xff]  ;;  %v224_v14 = vld [vmem:[%s558_s5 + $0x8] sm:$0xff]  ;;  %v225_v21 = vld [vmem:[%s558_s5 + $0x10] sm:$0xff] }
  0x2c   :  { %372 = vmatpush3.bf16.msra.mxu0 %v371_v5  ;;  %v380_v15 = vpack.c.bf16 %v224_v14, %v223_v13  ;;  %v321_v16 = vld [vmem:[#allocation5] ss:$0 sm:$0xff]  ;;  %v226_v22 = vld [vmem:[%s558_s5 + $0x18] sm:$0xff]  ;;  %v323_v24 = vld [vmem:[%s557_s4] ss:$0 sm:$0xff] }
  0x2d   :  { %375 = vmatpush3.bf16.msra.mxu1 %v374_v8  ;;  %379 = vmatprep.subr.bf16.mxu0 %v444_v1  ;;  %v383_v23 = vpack.c.bf16 %v226_v22, %v225_v21  ;;  %v325_v29 = vld [vmem:[#allocation2] ss:$0 sm:$0xff] }
  0x2e   :  { %376 = vmatprep.subr.bf16.mxu1 %v444_v1 }
  0x2f   :  { %346 = vmatmul.mubr.msk.f32.vlgmr.msra.gmra.mrb[0].mxu0 %vm62_vm1, %v52_v9 }
  0x30   :  { %367 = vmatprep.mubr.msk.f32.mxu0 %vm445_vm0, %v446_v2  ;;  %381 = vmatpush3.bf16.msra.mxu0 %v380_v15 }
  0x31   :  { %378 = vmatpush3.bf16.msra.mxu1 %v377_v12  ;;  %382 = vmatprep.subr.bf16.mxu0 %v444_v1 }
  0x34   :  { %384 = vmatpush3.bf16.msra.mxu0 %v383_v23 }
 0x102   :  { %v132_v17 = vpop.f32.mrb[0].mxu0 }
 0x103   :  { %v133_v18 = vadd.f32 %v321_v16, %v132_v17  ;;  %v347_v19 = vpop.f32.mrb[1].mxu0 }
 0x105   :  { %v136_v20 = vmax.f32 %v133_v18, 0.0 }
 0x107   :  { %357 = vmatmul.mubr.msk.f32.vlgmr.msra.gmra.mrb[0].mxu1 %vm148_vm2, %v136_v20 }
 0x1da   :  { %v218_v25 = vpop.f32.mrb[0].mxu1 }
 0x1db   :  { %v219_v26 = vadd.f32 %v323_v24, %v218_v25  ;;  %v358_v27 = vpop.f32.mrb[1].mxu1 }
 0x1dd   :  { %v222_v28 = vmax.f32 %v219_v26, 0.0 }
 0x1df   :  { %368 = vmatmul.mubr.msk.f32.vlgmr.msra.gmra.mrb[2].mxu0 %vm148_vm2, %v222_v28 }
 0x2b2   :  { %v303_v30 = vpop.f32.mrb[2].mxu0 }
 0x2b3   :  { %v304_v31 = vadd.f32 %v325_v29, %v303_v30  ;;  %v369_v32 = vpop.f32.mrb[3].mxu0 }
 0x2b5   :  { %v327_v33 = vmul.f32 -1.442695, %v304_v31 }
 0x2b7   :  { %390 = vpow2.f32 %v327_v33 }
 0x2c1   :  { %v391_v34 = vpop.eup %390 }
 0x2c2   :  { %v310_v35 = vadd.f32 1.0, %v391_v34 }
 0x2c4   :  { %392 = vrcp.f32 %v310_v35 }
 0x2ce   :  { %v393_v36 = vpop.eup %392 }
 0x2cf   :  { %314 = vst.msk [vmem:[%s560_s7] sm:$0x3] %vm313_vm3, %v393_v36 }
 0x2d0   :  { %319 = vsyncpa [#allocation4], 1 }
 0x2d1   :  { %320 = vsyncpa [#allocation6], 1 }

// kernel: tpu_custom_call.1
= control target key start
LH: loop header
LB: loop body
LE: loop exit
PB: predicated region body
PF: predicated region fallthrough
CT: control target
= control target key end

     0   :  { %8 = vsyncpa [#allocation3], 0  ;;  %s397_s0 = inlined_call_operand.hbm [shape: f32[2,128], index: 0, kind: input, shape index: {}]   ;;  %s398_s1 = inlined_call_operand.hbm [shape: f32[128,128], index: 1, kind: input, shape index: {}]   ;;  %s399_s2 = inlined_call_operand.vmem [shape: f32[1,128], index: 2, kind: input, shape index: {}]   ;;  %s400_s3 = inlined_call_operand.hbm [shape: f32[2,128], index: 3, kind: output, shape index: {}]  }
   0x1   :  { %9 = vsyncpa [#allocation6], 0 }
   0x2   :  { %10 = vsyncpa [#allocation4], 0  ;;  %s323_s12 = smov [#allocation2]   ;;  %s324_s14 = smov [#allocation5]  }
   0x3   :  { %s17_s13 = sshll.u32 %s323_s12, 4  ;;  %s26_s15 = sshll.u32 %s324_s14, 4  ;;  %s18_s13 = int_to_ptr.vmem [resolvable:$true] %s17_s13  ;;  %s351_s15 = int_to_ptr.vmem [resolvable:$true] %s26_s15 }
   0x4   :  { %s251_s18 = scalar_lea.hbm %s397_s0, 32 }
   0x5   :  { %p252_p0 = scmp.ne.s32.totalorder %s397_s0, %s251_s18  ;;  %p255_p1 = scmp.lt.u32.totalorder %s251_s18, %s397_s0 }
   0x7   :  { %p257_p2 = pnand %p255_p1, %p252_p0 }
   0x9   :  { %260 = shalt.err (!%p257_p2)
}
   0xa   :  { %s261_s23 = scalar_lea.vmem %s18_s13, 32  ;;  %p266_p4 = scmp.lt.s32.totalorder %s18_s13, %s18_s13 }
   0xb   :  { %p262_p3 = scmp.ne.s32.totalorder %s18_s13, %s261_s23  ;;  %p267_p5 = scmp.lt.s32.totalorder %s261_s23, %s261_s23 }
   0xd   :  { %p268_p6 = por %p267_p5, %p266_p4 }
   0xf   :  { %p269_p7 = pnand %p268_p6, %p262_p3 }
  0x11   :  { %272 = shalt.err (!%p269_p7)
}
  0x12   :  { %20 = dma.hbm_to_vmem [thread:$0]  %s397_s0, 32, %s18_s13, [#allocation3]  }
  0x13   :  { %s273_s28 = scalar_lea.hbm %s398_s1, 2048 }
  0x14   :  { %p274_p8 = scmp.ne.s32.totalorder %s398_s1, %s273_s28  ;;  %p277_p9 = scmp.lt.u32.totalorder %s273_s28, %s398_s1 }
  0x16   :  { %p279_p10 = pnand %p277_p9, %p274_p8 }
  0x18   :  { %282 = shalt.err (!%p279_p10)
}
  0x19   :  { %s283_s6 = scalar_lea.vmem %s351_s15, 2048  ;;  %p288_p12 = scmp.lt.s32.totalorder %s351_s15, %s351_s15 }
  0x1a   :  { %p284_p11 = scmp.ne.s32.totalorder %s351_s15, %s283_s6  ;;  %p289_p13 = scmp.lt.s32.totalorder %s283_s6, %s283_s6 }
  0x1c   :  { %p290_p0 = por %p289_p13, %p288_p12 }
  0x1e   :  { %p291_p1 = pnand %p290_p0, %p284_p11 }
  0x20   :  { %294 = shalt.err (!%p291_p1)
}
  0x21   :  { %s325_s0 = smov 128   ;;  %s326_s7 = smov 8  }
  0x22   :  { %32 = dma.hbm_to_vmem [thread:$0]  %s398_s1, 2048, %s351_s15, [#allocation6], %s325_s0, %s325_s0, %s326_s7  }
  0x23   :  { %317 = dma.done.wait [#allocation3], 32  }
  0x24   :  { %318 = vsyncadd [#allocation3], 4294967264 }
  0x25   :  { %319 = dma.done.wait [#allocation6], 2048  }
  0x26   :  { %320 = vsyncadd [#allocation6], 4294965248  ;;  %v327_v0 = vmov 0.0|0.0   ;;  %v328_v1 = vmov 0.0   ;;  %vm329_vm0 = vmmov 0   ;;  %v48_v2 = vld [vmem:[#allocation5] sm:$0xff] }
  0x27   :  { %219 = vmatprep.subr.bf16.mxu0 %v327_v0  ;;  %45 = vst [vmem:[#allocation7] sm:$0x3] %v328_v1  ;;  %216 = vmatprep.mubr.msk.f32.mxu0 %vm329_vm0, %v328_v1  ;;  %v49_v3 = vld [vmem:[#allocation5 + $0x8] sm:$0xff]  ;;  %v50_v4 = vld [vmem:[#allocation5 + $0x10] sm:$0xff]  ;;  %v51_v6 = vld [vmem:[#allocation5 + $0x18] sm:$0xff]  ;;  %s330_s11 = smov [#allocation7]  }
  0x28   :  { %v220_v5 = vpack.c.bf16 %v49_v3, %v48_v2  ;;  %v223_v7 = vpack.c.bf16 %v51_v6, %v50_v4  ;;  %v52_v8 = vld [vmem:[#allocation5 + $0x20] sm:$0xff]  ;;  %v53_v9 = vld [vmem:[#allocation5 + $0x28] sm:$0xff]  ;;  %v54_v11 = vld [vmem:[#allocation5 + $0x30] sm:$0xff]  ;;  %s156_s12 = sshll.u32 %s330_s11, 4  ;;  %s157_s12 = int_to_ptr.vmem [resolvable:$true] %s156_s12 }
  0x29   :  { %v226_v10 = vpack.c.bf16 %v53_v9, %v52_v8  ;;  %v55_v12 = vld [vmem:[#allocation5 + $0x38] sm:$0xff]  ;;  %v56_v14 = vld [vmem:[#allocation5 + $0x40] sm:$0xff]  ;;  %v57_v15 = vld [vmem:[#allocation5 + $0x48] sm:$0xff]  ;;  %s295_s13 = scalar_lea.vmem %s157_s12, 32  ;;  %p300_p3 = scmp.lt.s32.totalorder %s157_s12, %s157_s12 }
  0x2a   :  { %221 = vmatpush3.bf16.msra.mxu0 %v220_v5  ;;  %v229_v13 = vpack.c.bf16 %v55_v12, %v54_v11  ;;  %v232_v16 = vpack.c.bf16 %v57_v15, %v56_v14  ;;  %v58_v17 = vld [vmem:[#allocation5 + $0x50] sm:$0xff]  ;;  %v59_v18 = vld [vmem:[#allocation5 + $0x58] sm:$0xff]  ;;  %v60_v20 = vld [vmem:[#allocation5 + $0x60] sm:$0xff]  ;;  %p296_p2 = scmp.ne.s32.totalorder %s157_s12, %s295_s13  ;;  %p301_p4 = scmp.lt.s32.totalorder %s295_s13, %s295_s13 }
  0x2b   :  { %222 = vmatprep.subr.bf16.mxu0 %v327_v0  ;;  %v235_v19 = vpack.c.bf16 %v59_v18, %v58_v17  ;;  %v61_v21 = vld [vmem:[#allocation5 + $0x68] sm:$0xff]  ;;  %v62_v23 = vld [vmem:[#allocation5 + $0x70] sm:$0xff]  ;;  %v63_v24 = vld [vmem:[#allocation5 + $0x78] sm:$0xff] }
  0x2c   :  { %v238_v22 = vpack.c.bf16 %v61_v21, %v60_v20  ;;  %v241_v25 = vpack.c.bf16 %v63_v24, %v62_v23  ;;  %v47_v26 = vld [vmem:[#allocation2] sm:$0x3]  ;;  %p302_p5 = por %p301_p4, %p300_p3 }
  0x2d   :  { %v166_v31 = vld [vmem:[%s399_s2] ss:$0 sm:$0xff] }
  0x2e   :  { %224 = vmatpush3.bf16.msra.mxu0 %v223_v7  ;;  %v46_v27 = vld [vmem:[#allocation7] sm:$0x3]  ;;  %p303_p6 = pnand %p302_p5, %p296_p2 }
  0x2f   :  { %225 = vmatprep.subr.bf16.mxu0 %v327_v0 }
  0x32   :  { %227 = vmatpush3.bf16.msra.mxu0 %v226_v10 }
  0x33   :  { %228 = vmatprep.subr.bf16.mxu0 %v327_v0 }
  0x36   :  { %230 = vmatpush3.bf16.msra.mxu0 %v229_v13 }
  0x37   :  { %231 = vmatprep.subr.bf16.mxu0 %v327_v0 }
  0x3a   :  { %233 = vmatpush3.bf16.msra.mxu0 %v232_v16 }
  0x3b   :  { %234 = vmatprep.subr.bf16.mxu0 %v327_v0 }
  0x3e   :  { %236 = vmatpush3.bf16.msra.mxu0 %v235_v19 }
  0x3f   :  { %237 = vmatprep.subr.bf16.mxu0 %v327_v0 }
  0x42   :  { %239 = vmatpush3.bf16.msra.mxu0 %v238_v22 }
  0x43   :  { %240 = vmatprep.subr.bf16.mxu0 %v327_v0 }
  0x46   :  { %242 = vmatpush3.bf16.msra.mxu0 %v241_v25 }
  0x49   :  { %217 = vmatmul.mubr.f32.vlgmr.msra.gmra.mrb[0].mxu0 %v47_v26 }
 0x11c   :  { %v130_v28 = vpop.f32.mrb[0].mxu0 }
 0x11d   :  { %v134_v29 = vadd.f32 %v130_v28, %v46_v27  ;;  %v218_v30 = vpop.f32.mrb[1].mxu0 }
 0x11f   :  { %135 = vst [vmem:[#allocation7] sm:$0x3] %v134_v29 }
 0x126   :  { %v139_v32 = vld [vmem:[#allocation7] sm:$0x3] }
 0x127   :  { %v147_v33 = vadd.f32 %v166_v31, %v139_v32 }
 0x129   :  { %v148_v34 = vmax.f32 %v147_v33, 0.0 }
 0x12b   :  { %149 = vst [vmem:[#allocation7] sm:$0x3] %v148_v34 }
 0x12c   :  { %306 = shalt.err (!%p303_p6)
}
 0x12d   :  { %s307_s16 = scalar_lea.hbm %s400_s3, 32 }
 0x12e   :  { %p308_p7 = scmp.ne.s32.totalorder %s400_s3, %s307_s16  ;;  %p311_p8 = scmp.lt.u32.totalorder %s307_s16, %s400_s3 }
 0x130   :  { %p313_p9 = pnand %p311_p8, %p308_p7 }
 0x132   :  { %316 = shalt.err (!%p313_p9)
}
 0x133   :  { %159 = dma.vmem_to_hbm [thread:$0]  %s157_s12, 32, %s400_s3, [#allocation4]  }
 0x134   :  { %321 = dma.done.wait [#allocation4], 32  }
 0x135   :  { %322 = vsyncadd [#allocation4], 4294967264 }
 0x136   :  { %163 = vsyncpa [#allocation3], 1 }
 0x137   :  { %164 = vsyncpa [#allocation6], 1 }
 0x138   :  { %165 = vsyncpa [#allocation4], 1 }

</bundles_post_ra>
